<compile_context>
chip_gen: v6e
topology: v6e:2x2x1
jax: 0.10.0
libtpu: 0.0.40
codegen_flags: <defaults>
</compile_context>

<pallas_src>
import jax
import jax.numpy as jnp
from jax.experimental import pallas as pl
from jax.experimental.pallas import tpu as pltpu

HIDDEN = 100          # logical hidden width (nn.Linear(iDim, 100))
HIDDEN_PAD = 128      # padded to one full 128-lane group
LEAKY_SLOPE = 0.01    # PyTorch nn.LeakyReLU default negative_slope
LN_EPS = 1e-5         # PyTorch nn.LayerNorm default eps


def _round_up(n, m):
    return ((n + m - 1) // m) * m


def _cdiv(a, b):
    return -(-a // b)


def _leaky_relu(x):
    return jnp.where(x > 0, x, LEAKY_SLOPE * x)


def rt_nw_kernel(x_ref, w1_ref, w2_ref, vec_ref, out_ref):
    """One batch tile: (TB, iDim) f32 -> (TB, 1) f32."""
    x = x_ref[...]                                   # (TB, iDim) f32
    vecs = vec_ref[...]                              # (5, 128) f32
    b1 = vecs[0:1, :]                                # layer-1 bias
    b2 = vecs[1:2, :]                                # layer-2 bias (be1 folded in)
    gw3 = vecs[2:3, :]                               # g2 * w3
    c1 = vecs[3:4, 0:1]                              # sum(g2 * w3)
    c2 = vecs[4:5, 0:1]                              # be2 . w3 + b3
    inv_h = jnp.float32(1.0 / HIDDEN)

    # ---- layer 1: Linear (bf16 MXU, f32 acc) + LeakyReLU + LN core ----
    # LN1's gamma/beta were folded into w2/b2 at pack time, so only the
    # normalization core (h - mu) * rsqrt(var + eps) is computed here.
    h = jnp.dot(x.astype(jnp.bfloat16), w1_ref[...],
                preferred_element_type=jnp.float32)
    h = _leaky_relu(h + b1)                          # padded lanes stay 0
    s1 = jnp.sum(h, axis=-1, keepdims=True)          # 128-lane sums == 100-feat sums
    s2 = jnp.sum(h * h, axis=-1, keepdims=True)
    mu = s1 * inv_h
    var = s2 * inv_h - mu * mu
    h = (h - mu) * jax.lax.rsqrt(var + LN_EPS)
    # (padded lanes of h are now -mu*inv, but rows 100..127 of w2 are zero)

    # ---- layer 2: Linear (bf16 MXU, f32 acc) + LeakyReLU ----
    h = jnp.dot(h.astype(jnp.bfloat16), w2_ref[...],
                preferred_element_type=jnp.float32)
    h = _leaky_relu(h + b2)                          # padded lanes stay 0

    # ---- fused LN2 + rt head ----
    #   rt = inv2 * (sum(h * g2*w3) - mu2 * sum(g2*w3)) + (be2.w3 + b3)
    s1 = jnp.sum(h, axis=-1, keepdims=True)
    s2 = jnp.sum(h * h, axis=-1, keepdims=True)
    t = jnp.sum(h * gw3, axis=-1, keepdims=True)
    mu = s1 * inv_h
    var = s2 * inv_h - mu * mu
    inv = jax.lax.rsqrt(var + LN_EPS)
    rt = inv * (t - mu * c1) + c2
    out_ref[...] = rt.astype(out_ref.dtype)


def rt_nw_forward(x, packed, *, tb=2048):
    """x: (B, iDim). Returns rt: (B, 1) float32."""
    w1p, w2p, vecs = packed
    x = jnp.asarray(x, jnp.float32)
    B, i_dim = x.shape
    assert w1p.shape == (i_dim, HIDDEN_PAD)

    # Tile-size selection:
    #  * multiple of 8 (f32 sublanes), capped by the batch,
    #  * if more than one tile is needed, use an EVEN number of grid steps so
    #    the "parallel" batch axis splits evenly across both TCs on v7x.
    b8 = _round_up(B, 8)
    tbe = min(_round_up(tb, 8), b8)
    n_tiles = _cdiv(b8, tbe)
    if n_tiles > 1 and n_tiles % 2 == 1:
        n_tiles += 1
    tbe = _round_up(_cdiv(b8, n_tiles), 8)
    b_pad = n_tiles * tbe
    if b_pad != B:
        x = jnp.pad(x, ((0, b_pad - B), (0, 0)))     # padded rows sliced off below

    const = lambda i: (0, 0)                         # weights: VMEM-resident
    flops = 2 * b_pad * (i_dim * HIDDEN_PAD
                         + HIDDEN_PAD * HIDDEN_PAD
                         + 3 * HIDDEN_PAD)
    bytes_accessed = (b_pad * i_dim * 4 + b_pad * 4
                      + w1p.size * 2 + w2p.size * 2 + vecs.size * 4)

    out = pl.pallas_call(
        rt_nw_kernel,
        out_shape=jax.ShapeDtypeStruct((b_pad, 1), jnp.float32),
        grid=(n_tiles,),
        in_specs=[
            pl.BlockSpec((tbe, i_dim), lambda i: (i, 0)),        # x tile (pipelined)
            pl.BlockSpec((i_dim, HIDDEN_PAD), const),            # w1 (bf16)
            pl.BlockSpec((HIDDEN_PAD, HIDDEN_PAD), const),       # w2' (bf16, LN1 folded)
            pl.BlockSpec((5, HIDDEN_PAD), const),                # [b1; b2'; gw3; C1; C2]
        ],
        out_specs=pl.BlockSpec((tbe, 1), lambda i: (i, 0)),
        compiler_params=pltpu.CompilerParams(
            dimension_semantics=("parallel",)),                  # dual-TC on v7x
        cost_estimate=pl.CostEstimate(
            flops=int(flops),
            transcendentals=int(2 * b_pad),                      # two rsqrt per row
            bytes_accessed=int(bytes_accessed)),
    )(x, w1p, w2p, vecs)
    return out[:B]


def init_params(key, ip_dim, hidden=HIDDEN):
    """Logical (unpadded) params, PyTorch-Linear-like uniform fan-in init."""
    ks = jax.random.split(key, 6)

    def lin(kw, kb, fan_in, fan_out):
        bound = 1.0 / jnp.sqrt(fan_in)
        w = jax.random.uniform(kw, (fan_in, fan_out), jnp.float32, -bound, bound)
        b = jax.random.uniform(kb, (fan_out,), jnp.float32, -bound, bound)
        return w, b

    w1, b1 = lin(ks[0], ks[1], ip_dim, hidden)
    w2, b2 = lin(ks[2], ks[3], hidden, hidden)
    w3, b3 = lin(ks[4], ks[5], hidden, 1)
    ones = jnp.ones((hidden,), jnp.float32)
    zeros = jnp.zeros((hidden,), jnp.float32)
    return {
        "w1": w1, "b1": b1, "g1": ones, "be1": zeros,
        "w2": w2, "b2": b2, "g2": ones, "be2": zeros,
        "w3": w3, "b3": b3,
    }


def pack_params(params):
    """Fold LN affines, pad hidden 100->128 (zeros), pack kernel operands.

    Returns (w1p bf16 (iDim,128), w2p bf16 (128,128), vecs f32 (5,128)).
    """
    f32 = jnp.float32
    i_dim = params["w1"].shape[0]

    w1 = params["w1"].astype(f32)
    b1 = params["b1"].astype(f32)
    g1 = params["g1"].astype(f32)
    be1 = params["be1"].astype(f32)
    w2 = params["w2"].astype(f32)
    b2 = params["b2"].astype(f32)
    g2 = params["g2"].astype(f32)
    be2 = params["be2"].astype(f32)
    w3 = params["w3"].astype(f32).reshape(-1)
    b3 = params["b3"].astype(f32).reshape(())

    # Fold LN1 affine into linear2 (exact reassociation, done in f32 on host):
    #   ln1(h) @ w2 + b2 = ((h-mu)*inv) @ (diag(g1) @ w2) + (be1 @ w2 + b2)
    w2f = g1[:, None] * w2
    b2f = b2 + be1 @ w2

    # Fuse LN2 affine + rt head:
    #   ln2(h) @ w3 + b3 = inv * (sum(h * g2*w3) - mu * sum(g2*w3)) + (be2.w3 + b3)
    gw3 = g2 * w3
    c1 = jnp.sum(gw3)
    c2 = jnp.dot(be2, w3) + b3

    def pad_row(v):                                  # (HIDDEN,) -> (HIDDEN_PAD,)
        return jnp.zeros((HIDDEN_PAD,), f32).at[:HIDDEN].set(v)

    w1p = jnp.zeros((i_dim, HIDDEN_PAD), f32).at[:, :HIDDEN].set(w1)
    w2p = jnp.zeros((HIDDEN_PAD, HIDDEN_PAD), f32).at[:HIDDEN, :HIDDEN].set(w2f)
    vecs = jnp.stack([
        pad_row(b1),
        pad_row(b2f),
        pad_row(gw3),
        jnp.full((HIDDEN_PAD,), c1, f32),
        jnp.full((HIDDEN_PAD,), c2, f32),
    ])
    # bf16 MXU operands (f32 accumulation in-kernel); zero padding survives cast.
    return (w1p.astype(jnp.bfloat16), w2p.astype(jnp.bfloat16), vecs)


def rt_nw_reference(x, params):
    """Pure-JAX f32 reference (unfused, centered-variance LayerNorm)."""
    def ln(h, g, b):
        mu = jnp.mean(h, axis=-1, keepdims=True)
        xc = h - mu
        var = jnp.mean(xc * xc, axis=-1, keepdims=True)
        return xc * jax.lax.rsqrt(var + LN_EPS) * g + b

    h = x @ params["w1"] + params["b1"]
    h = _leaky_relu(h)
    h = ln(h, params["g1"], params["be1"])
    h = h @ params["w2"] + params["b2"]
    h = _leaky_relu(h)
    h = ln(h, params["g2"], params["be2"])
    return h @ params["w3"] + params["b3"]


if __name__ == "__main__":
    key = jax.random.PRNGKey(0)
    kx1, kx2, kp, kg1, kb1, kg2, kb2 = jax.random.split(key, 7)

    IP_DIM = 32
    params = init_params(kp, IP_DIM)
    # Use non-trivial LayerNorm affines so the LN1/LN2 algebraic folds are
    # actually exercised (PyTorch default init would make them identity).
    params["g1"] = 1.0 + 0.1 * jax.random.normal(kg1, (HIDDEN,), jnp.float32)
    params["be1"] = 0.1 * jax.random.normal(kb1, (HIDDEN,), jnp.float32)
    params["g2"] = 1.0 + 0.1 * jax.random.normal(kg2, (HIDDEN,), jnp.float32)
    params["be2"] = 0.1 * jax.random.normal(kb2, (HIDDEN,), jnp.float32)
    packed = pack_params(params)

    # bf16 MXU operands -> relaxed tolerance vs the pure-f32 reference.
    ATOL = RTOL = 5e-2

    # Small single-tile check.
    x_small = jax.random.normal(kx1, (8, IP_DIM), jnp.float32)
    rt_small = jax.block_until_ready(rt_nw_forward(x_small, packed))
    ref_small = rt_nw_reference(x_small, params)
    assert rt_small.shape == (8, 1)
    assert jnp.allclose(rt_small, ref_small, atol=ATOL, rtol=RTOL), \
        "mismatch vs reference (single tile)"

    # Multi-tile check: exercises the batch grid, even-grid (v7x) tile logic,
    # ragged-tail zero padding and the 'parallel' batch axis
    # (B=300, tb=128 -> 4 tiles of 80 rows, padded rows dropped).
    x_big = jax.random.normal(kx2, (300, IP_DIM), jnp.float32)
    rt_big = jax.block_until_ready(rt_nw_forward(x_big, packed, tb=128))
    ref_big = rt_nw_reference(x_big, params)
    assert rt_big.shape == (300, 1)
    assert jnp.allclose(rt_big, ref_big, atol=ATOL, rtol=RTOL), \
        "mismatch vs reference (multi tile)"

    print("KERNEL_OK")
</pallas_src>

<mosaic_0001>
module attributes {stable_mosaic.version = 11 : i64} {
  func.func @rt_nw_kernel(%arg0: i32, %arg1: memref<8x32xf32, #tpu.memory_space<vmem>>, %arg2: memref<32x128xbf16, #tpu.memory_space<vmem>>, %arg3: memref<128x128xbf16, #tpu.memory_space<vmem>>, %arg4: memref<5x128xf32, #tpu.memory_space<vmem>>, %arg5: memref<8x1xf32, #tpu.memory_space<vmem>>) attributes {dimension_semantics = [#tpu.dimension_semantics<parallel>], iteration_bounds = array<i64: 1>, scalar_prefetch = 0 : i64, scratch_operands = 0 : i64, tpu.core_type = #tpu.core_type<tc>, window_params = [{transform_indices = @transform_0, window_bounds = array<i64: 8, 32>}, {pipeline_mode = #tpu.pipeline_mode<synchronous>, transform_indices = @transform_1, window_bounds = array<i64: 32, 128>}, {pipeline_mode = #tpu.pipeline_mode<synchronous>, transform_indices = @transform_2, window_bounds = array<i64: 128, 128>}, {pipeline_mode = #tpu.pipeline_mode<synchronous>, transform_indices = @transform_3, window_bounds = array<i64: 5, 128>}, {transform_indices = @transform_4, window_bounds = array<i64: 8, 1>}]} {
    %c0 = arith.constant 0 : index
    %c0_0 = arith.constant 0 : index
    %0 = vector.load %arg1[%c0, %c0_0] : memref<8x32xf32, #tpu.memory_space<vmem>>, vector<8x32xf32>
    %c0_1 = arith.constant 0 : index
    %c0_2 = arith.constant 0 : index
    %1 = vector.load %arg4[%c0_1, %c0_2] : memref<5x128xf32, #tpu.memory_space<vmem>>, vector<5x128xf32>
    %2 = vector.extract_strided_slice %1 {offsets = [0, 0], sizes = [1, 128], strides = [1, 1]} : vector<5x128xf32> to vector<1x128xf32>
    %3 = vector.extract_strided_slice %1 {offsets = [1, 0], sizes = [1, 128], strides = [1, 1]} : vector<5x128xf32> to vector<1x128xf32>
    %4 = vector.extract_strided_slice %1 {offsets = [2, 0], sizes = [1, 128], strides = [1, 1]} : vector<5x128xf32> to vector<1x128xf32>
    %5 = vector.extract_strided_slice %1 {offsets = [3, 0], sizes = [1, 1], strides = [1, 1]} : vector<5x128xf32> to vector<1x1xf32>
    %6 = vector.extract_strided_slice %1 {offsets = [4, 0], sizes = [1, 1], strides = [1, 1]} : vector<5x128xf32> to vector<1x1xf32>
    %7 = arith.truncf %0 : vector<8x32xf32> to vector<8x32xbf16>
    %c0_3 = arith.constant 0 : index
    %c0_4 = arith.constant 0 : index
    %8 = vector.load %arg2[%c0_3, %c0_4] : memref<32x128xbf16, #tpu.memory_space<vmem>>, vector<32x128xbf16>
    %cst = arith.constant dense<0.000000e+00> : vector<8x128xf32>
    %9 = tpu.matmul %7, %8, %cst {dimension_numbers = #tpu.dot_dimension_numbers<[1], [0], [0], [1], [0, 0, 1, 1], [], []>} : vector<8x32xbf16>, vector<32x128xbf16>, vector<8x128xf32> -> vector<8x128xf32>
    %10 = vector.broadcast %2 : vector<1x128xf32> to vector<8x128xf32>
    %11 = arith.addf %9, %10 : vector<8x128xf32>
    %cst_5 = arith.constant 0.000000e+00 : f32
    %12 = vector.broadcast %cst_5 : f32 to vector<8x128xf32>
    %13 = arith.cmpf ogt, %11, %12 : vector<8x128xf32>
    %cst_6 = arith.constant 0.00999999977 : f32
    %14 = vector.broadcast %cst_6 : f32 to vector<8x128xf32>
    %15 = arith.mulf %14, %11 : vector<8x128xf32>
    %16 = arith.select %13, %11, %15 : vector<8x128xi1>, vector<8x128xf32>
    %cst_7 = arith.constant dense<0.000000e+00> : vector<8xf32>
    %17 = vector.multi_reduction <add>, %16, %cst_7 [1] : vector<8x128xf32> to vector<8xf32>
    %18 = vector.shape_cast %17 : vector<8xf32> to vector<8x1xf32>
    %19 = arith.mulf %16, %16 : vector<8x128xf32>
    %cst_8 = arith.constant dense<0.000000e+00> : vector<8xf32>
    %20 = vector.multi_reduction <add>, %19, %cst_8 [1] : vector<8x128xf32> to vector<8xf32>
    %21 = vector.shape_cast %20 : vector<8xf32> to vector<8x1xf32>
    %cst_9 = arith.constant 0.00999999977 : f32
    %22 = vector.broadcast %cst_9 : f32 to vector<8x1xf32>
    %23 = arith.mulf %18, %22 : vector<8x1xf32>
    %cst_10 = arith.constant 0.00999999977 : f32
    %24 = vector.broadcast %cst_10 : f32 to vector<8x1xf32>
    %25 = arith.mulf %21, %24 : vector<8x1xf32>
    %26 = arith.mulf %23, %23 : vector<8x1xf32>
    %27 = arith.subf %25, %26 : vector<8x1xf32>
    %28 = vector.broadcast %23 : vector<8x1xf32> to vector<8x128xf32>
    %29 = arith.subf %16, %28 : vector<8x128xf32>
    %cst_11 = arith.constant 9.99999974E-6 : f32
    %30 = vector.broadcast %cst_11 : f32 to vector<8x1xf32>
    %31 = arith.addf %27, %30 : vector<8x1xf32>
    %32 = math.rsqrt %31 : vector<8x1xf32>
    %33 = vector.broadcast %32 : vector<8x1xf32> to vector<8x128xf32>
    %34 = arith.mulf %29, %33 : vector<8x128xf32>
    %35 = arith.truncf %34 : vector<8x128xf32> to vector<8x128xbf16>
    %c0_12 = arith.constant 0 : index
    %c0_13 = arith.constant 0 : index
    %36 = vector.load %arg3[%c0_12, %c0_13] : memref<128x128xbf16, #tpu.memory_space<vmem>>, vector<128x128xbf16>
    %cst_14 = arith.constant dense<0.000000e+00> : vector<8x128xf32>
    %37 = tpu.matmul %35, %36, %cst_14 {dimension_numbers = #tpu.dot_dimension_numbers<[1], [0], [0], [1], [0, 0, 1, 1], [], []>} : vector<8x128xbf16>, vector<128x128xbf16>, vector<8x128xf32> -> vector<8x128xf32>
    %38 = vector.broadcast %3 : vector<1x128xf32> to vector<8x128xf32>
    %39 = arith.addf %37, %38 : vector<8x128xf32>
    %cst_15 = arith.constant 0.000000e+00 : f32
    %40 = vector.broadcast %cst_15 : f32 to vector<8x128xf32>
    %41 = arith.cmpf ogt, %39, %40 : vector<8x128xf32>
    %cst_16 = arith.constant 0.00999999977 : f32
    %42 = vector.broadcast %cst_16 : f32 to vector<8x128xf32>
    %43 = arith.mulf %42, %39 : vector<8x128xf32>
    %44 = arith.select %41, %39, %43 : vector<8x128xi1>, vector<8x128xf32>
    %cst_17 = arith.constant dense<0.000000e+00> : vector<8xf32>
    %45 = vector.multi_reduction <add>, %44, %cst_17 [1] : vector<8x128xf32> to vector<8xf32>
    %46 = vector.shape_cast %45 : vector<8xf32> to vector<8x1xf32>
    %47 = arith.mulf %44, %44 : vector<8x128xf32>
    %cst_18 = arith.constant dense<0.000000e+00> : vector<8xf32>
    %48 = vector.multi_reduction <add>, %47, %cst_18 [1] : vector<8x128xf32> to vector<8xf32>
    %49 = vector.shape_cast %48 : vector<8xf32> to vector<8x1xf32>
    %50 = vector.broadcast %4 : vector<1x128xf32> to vector<8x128xf32>
    %51 = arith.mulf %44, %50 : vector<8x128xf32>
    %cst_19 = arith.constant dense<0.000000e+00> : vector<8xf32>
    %52 = vector.multi_reduction <add>, %51, %cst_19 [1] : vector<8x128xf32> to vector<8xf32>
    %53 = vector.shape_cast %52 : vector<8xf32> to vector<8x1xf32>
    %cst_20 = arith.constant 0.00999999977 : f32
    %54 = vector.broadcast %cst_20 : f32 to vector<8x1xf32>
    %55 = arith.mulf %46, %54 : vector<8x1xf32>
    %cst_21 = arith.constant 0.00999999977 : f32
    %56 = vector.broadcast %cst_21 : f32 to vector<8x1xf32>
    %57 = arith.mulf %49, %56 : vector<8x1xf32>
    %58 = arith.mulf %55, %55 : vector<8x1xf32>
    %59 = arith.subf %57, %58 : vector<8x1xf32>
    %cst_22 = arith.constant 9.99999974E-6 : f32
    %60 = vector.broadcast %cst_22 : f32 to vector<8x1xf32>
    %61 = arith.addf %59, %60 : vector<8x1xf32>
    %62 = math.rsqrt %61 : vector<8x1xf32>
    %63 = vector.broadcast %5 : vector<1x1xf32> to vector<8x1xf32>
    %64 = arith.mulf %55, %63 : vector<8x1xf32>
    %65 = arith.subf %53, %64 : vector<8x1xf32>
    %66 = arith.mulf %62, %65 : vector<8x1xf32>
    %67 = vector.broadcast %6 : vector<1x1xf32> to vector<8x1xf32>
    %68 = arith.addf %66, %67 : vector<8x1xf32>
    %c0_23 = arith.constant 0 : index
    %c0_24 = arith.constant 0 : index
    %69 = vector.load %arg5[%c0_23, %c0_24] : memref<8x1xf32, #tpu.memory_space<vmem>>, vector<8x1xf32>
    tpu.vector_store %arg5[%c0_23, %c0_24], %68 {strides = array<i32>} : memref<8x1xf32, #tpu.memory_space<vmem>>, vector<8x1xf32>,
    return
  }
  func.func @transform_0(%arg0: i32) -> (i32, i32) {
    %c0_i32 = arith.constant 0 : i32
    %c0_i32_0 = arith.constant 0 : i32
    return %arg0, %c0_i32 : i32, i32
  }
  func.func @transform_1(%arg0: i32) -> (i32, i32) {
    %c0_i32 = arith.constant 0 : i32
    %c0_i32_0 = arith.constant 0 : i32
    %c0_i32_1 = arith.constant 0 : i32
    return %c0_i32, %c0_i32_0 : i32, i32
  }
  func.func @transform_2(%arg0: i32) -> (i32, i32) {
    %c0_i32 = arith.constant 0 : i32
    %c0_i32_0 = arith.constant 0 : i32
    %c0_i32_1 = arith.constant 0 : i32
    return %c0_i32, %c0_i32_0 : i32, i32
  }
  func.func @transform_3(%arg0: i32) -> (i32, i32) {
    %c0_i32 = arith.constant 0 : i32
    %c0_i32_0 = arith.constant 0 : i32
    %c0_i32_1 = arith.constant 0 : i32
    return %c0_i32, %c0_i32_0 : i32, i32
  }
  func.func @transform_4(%arg0: i32) -> (i32, i32) {
    %c0_i32 = arith.constant 0 : i32
    %c0_i32_0 = arith.constant 0 : i32
    return %arg0, %c0_i32 : i32, i32
  }
}

</mosaic_0001>

<bundles_post_ra>
// kernel: tpu_custom_call.1
= control target key start
LH: loop header
LB: loop body
LE: loop exit
PB: predicated region body
PF: predicated region fallthrough
CT: control target
= control target key end

     0   :  { %9 = vsyncpa [#allocation3], 0  ;;  %s524_s0 = inlined_call_operand.hbm [shape: f32[8,32], index: 0, kind: input, shape index: {}]   ;;  %s525_s1 = inlined_call_operand.hbm [shape: bf16[32,128], index: 1, kind: input, shape index: {}]   ;;  %s526_s2 = inlined_call_operand.hbm [shape: bf16[128,128], index: 2, kind: input, shape index: {}]   ;;  %s527_s3 = inlined_call_operand.hbm [shape: f32[5,128], index: 3, kind: input, shape index: {}]   ;;  %s528_s4 = inlined_call_operand.vmem [shape: f32[8,1], index: 4, kind: output, shape index: {}]  }
   0x1   :  { %10 = vsyncpa [#allocation5], 0 }
   0x2   :  { %11 = vsyncpa [#allocation8], 0  ;;  %s462_s15 = smov [#allocation4]  }
   0x3   :  { %s27_s16 = sshll.u32 %s462_s15, 4  ;;  %s28_s16 = int_to_ptr.vmem [resolvable:$true] %s27_s16 }
   0x4   :  { %s384_s17 = scalar_lea.vmem %s28_s16, 256  ;;  %p389_p1 = scmp.lt.s32.totalorder %s28_s16, %s28_s16 }
   0x5   :  { %p385_p0 = scmp.ne.s32.totalorder %s28_s16, %s384_s17  ;;  %p390_p2 = scmp.lt.s32.totalorder %s384_s17, %s384_s17 }
   0x7   :  { %p391_p3 = por %p390_p2, %p389_p1 }
   0x9   :  { %p392_p4 = pnand %p391_p3, %p385_p0 }
   0xb   :  { %395 = shalt.err (!%p392_p4)
}
   0xc   :  { %s463_s18 = smov 64   ;;  %s464_s19 = smov 4  }
   0xd   :  { %33 = dma.hbm_to_vmem [thread:$0]  %s525_s1, 256, %s28_s16, [#allocation5], %s463_s18, %s463_s18, %s464_s19  }
   0xe   :  { %s465_s22 = smov [#allocation2]   ;;  %s466_s24 = smov [#allocation6]  }
   0xf   :  { %s18_s23 = sshll.u32 %s465_s22, 4  ;;  %s39_s25 = sshll.u32 %s466_s24, 4  ;;  %s19_s23 = int_to_ptr.vmem [resolvable:$true] %s18_s23  ;;  %s40_s25 = int_to_ptr.vmem [resolvable:$true] %s39_s25 }
  0x10   :  { %s404_s26 = scalar_lea.vmem %s19_s23, 128  ;;  %p409_p6 = scmp.lt.s32.totalorder %s19_s23, %s19_s23 }
  0x11   :  { %p405_p5 = scmp.ne.s32.totalorder %s19_s23, %s404_s26  ;;  %p410_p7 = scmp.lt.s32.totalorder %s404_s26, %s404_s26 }
  0x13   :  { %p411_p8 = por %p410_p7, %p409_p6 }
  0x15   :  { %p412_p9 = pnand %p411_p8, %p405_p5 }
  0x17   :  { %415 = shalt.err (!%p412_p9)
}
  0x18   :  { %21 = dma.hbm_to_vmem [thread:$0]  %s524_s0, 128, %s19_s23, [#allocation3]  }
  0x19   :  { %s424_s29 = scalar_lea.vmem %s40_s25, 1024  ;;  %p429_p11 = scmp.lt.s32.totalorder %s40_s25, %s40_s25 }
  0x1a   :  { %p425_p10 = scmp.ne.s32.totalorder %s40_s25, %s424_s29  ;;  %p430_p12 = scmp.lt.s32.totalorder %s424_s29, %s424_s29 }
  0x1c   :  { %p431_p13 = por %p430_p12, %p429_p11 }
  0x1e   :  { %p432_p0 = pnand %p431_p13, %p425_p10 }
  0x20   :  { %435 = shalt.err (!%p432_p0)
}
  0x21   :  { %45 = dma.hbm_to_vmem [thread:$0]  %s526_s2, 1024, %s40_s25, [#allocation5], %s463_s18, %s463_s18, %s464_s19  }
  0x22   :  { %s467_s5 = smov [#allocation7]  }
  0x23   :  { %s52_s6 = sshll.u32 %s467_s5, 4  ;;  %s53_s6 = int_to_ptr.vmem [resolvable:$true] %s52_s6 }
  0x24   :  { %s444_s7 = scalar_lea.vmem %s53_s6, 128  ;;  %p449_p2 = scmp.lt.s32.totalorder %s53_s6, %s53_s6 }
  0x25   :  { %p445_p1 = scmp.ne.s32.totalorder %s53_s6, %s444_s7  ;;  %p450_p3 = scmp.lt.s32.totalorder %s444_s7, %s444_s7 }
  0x27   :  { %p451_p4 = por %p450_p3, %p449_p2 }
  0x29   :  { %p452_p5 = pnand %p451_p4, %p445_p1 }
  0x2b   :  { %455 = shalt.err (!%p452_p5)
}
  0x2c   :  { %55 = dma.hbm_to_vmem [thread:$0]  %s527_s3, 128, %s53_s6, [#allocation8]  }
  0x2d   :  { %456 = dma.done.wait [#allocation3], 128  }
  0x2e   :  { %457 = vsyncadd [#allocation3], 4294967168 }
  0x2f   :  { %458 = dma.done.wait [#allocation5], 1280  }
  0x30   :  { %459 = vsyncadd [#allocation5], 4294966016 }
  0x31   :  { %460 = dma.done.wait [#allocation8], 128  }
  0x32   :  { %461 = vsyncadd [#allocation8], 4294967168  ;;  %v468_v0 = vmov 0.0   ;;  %vm469_vm0 = vmmov 0   ;;  %v362_v1 = vld [vmem:[#allocation4 + $0x8] sm:$0xff]   ;;  %v363_v2 = vld [vmem:[#allocation4] sm:$0xff]   ;;  %v76_v6 = vlaneseq }
  0x33   :  { %326 = vmatprep.subr.bf16.mxu0 %v468_v0  ;;  %330 = vmatprep.mubr.msk.bf16.mxu0 %vm469_vm0, %v468_v0  ;;  %v69_v3 = vld [vmem:[#allocation2] sm:$0xff]  ;;  %vm92_vm1 = vcmask 261120   ;;  %v364_v5 = vld [vmem:[#allocation6 + $0x38] sm:$0xff]   ;;  %v510_v9 = vld [vmem:[#allocation7] sm:$0x1f]  ;;  %vm294_vm4 = vcmask 7168  }
  0x34   :  { %334 = vmatprep.subr.bf16.mxu1 %v468_v0  ;;  %350 = vmatprep.mubr.msk.bf16.mxu1 %vm469_vm0, %v468_v0  ;;  %v71_v4 = vpack.c.bf16 %v69_v3, %v69_v3  ;;  %v507_v7 = vshrl.u32 %v76_v6, 7  ;;  %v365_v19 = vld [vmem:[#allocation6 + $0x30] sm:$0xff]   ;;  %v366_v20 = vld [vmem:[#allocation6 + $0x28] sm:$0xff]   ;;  %v367_v21 = vld [vmem:[#allocation6 + $0x20] sm:$0xff]  }
  0x35   :  { %327 = vmatpush3.bf16.msra.mxu0 %v362_v1  ;;  %335 = vmatpush3.bf16.msra.mxu1 %v364_v5  ;;  %v368_v22 = vld [vmem:[#allocation6 + $0x18] sm:$0xff]   ;;  %v369_v23 = vld [vmem:[#allocation6 + $0x10] sm:$0xff]   ;;  %v370_v24 = vld [vmem:[#allocation6 + $0x8] sm:$0xff]  }
  0x36   :  { %328 = vmatprep.subr.bf16.mxu0 %v468_v0  ;;  %336 = vmatprep.subr.bf16.mxu1 %v468_v0  ;;  %v78_v8 = vsub.s32 0, %v507_v7  ;;  %v371_v25 = vld [vmem:[#allocation6] sm:$0xff]   ;;  %v171_v37 = vsub.s32 1, %v507_v7  ;;  %v271_v39 = vsub.s32 2, %v507_v7  ;;  %v284_v57 = vsub.s32 3, %v507_v7 }
  0x37   :  { %v291_v59 = vsub.s32 4, %v507_v7 }
  0x38   :  { %v79_v10 = vrot.slane %v510_v9, %v78_v8  ;;  %v172_v38 = vrot.slane %v510_v9, %v171_v37  ;;  %v272_v43 = vrot.slane %v510_v9, %v271_v39  ;;  %v285_v58 = vrot.slane %v510_v9, %v284_v57 }
  0x39   :  { %329 = vmatpush3.bf16.msra.mxu0 %v363_v2  ;;  %337 = vmatpush3.bf16.msra.mxu1 %v365_v19  ;;  %v292_v62 = vrot.slane %v510_v9, %v291_v59 }
  0x3a   :  { %338 = vmatprep.subr.bf16.mxu1 %v468_v0 }
  0x3c   :  { %331 = vmatmul.mubr.msk.bf16.vlgmr.msra.gmra.mxu0 %vm92_vm1, %v71_v4 }
  0x3d   :  { %339 = vmatpush3.bf16.msra.mxu1 %v366_v20 }
  0x3e   :  { %340 = vmatprep.subr.bf16.mxu1 %v468_v0 }
  0x41   :  { %341 = vmatpush3.bf16.msra.mxu1 %v367_v21 }
  0x42   :  { %342 = vmatprep.subr.bf16.mxu1 %v468_v0 }
  0x45   :  { %343 = vmatpush3.bf16.msra.mxu1 %v368_v22 }
  0x46   :  { %344 = vmatprep.subr.bf16.mxu1 %v468_v0 }
  0x49   :  { %345 = vmatpush3.bf16.msra.mxu1 %v369_v23 }
  0x4a   :  { %346 = vmatprep.subr.bf16.mxu1 %v468_v0 }
  0x4d   :  { %347 = vmatpush3.bf16.msra.mxu1 %v370_v24 }
  0x4e   :  { %348 = vmatprep.subr.bf16.mxu1 %v468_v0 }
  0x51   :  { %349 = vmatpush3.bf16.msra.mxu1 %v371_v25 }
  0xfc   :  { %v130_v11 = vpop.f32.mrf.mxu0 }
  0xfd   :  { %v131_v12 = vadd.f32 %v130_v11, %v79_v10 }
  0xfe   :  { %v332_v13 = vpop.f32.mrf.mxu0 }
  0xff   :  { %v137_v14 = vmul.f32 0.01, %v131_v12  ;;  %vm136_vm2 = vcmp.gt.f32.partialorder %v131_v12, 0.0 }
 0x100   :  { %v133_v15 = vpop.f32.mrf.mxu0 }
 0x101   :  { %v138_v16 = vsel %vm136_vm2, %v131_v12, %v137_v14 }
 0x102   :  { %139 = vadd.xlane.f32.xlu0 %v138_v16  ;;  %v333_v17 = vpop.f32.mrf.mxu0  ;;  %v141_v18 = vmul.f32 %v138_v16, %v138_v16 }
 0x106   :  { %142 = vadd.xlane.f32.xlu0 %v141_v18 }
 0x18b   :  { %v140_v26 = vpop.xlane.xlu0 %139 }
 0x18c   :  { %v144_v27 = vmul.f32 0.01, %v140_v26 }
 0x18e   :  { %v146_v29 = vmul.f32 %v144_v27, %v144_v27  ;;  %v148_v33 = vsub.f32 %v138_v16, %v144_v27 }
 0x18f   :  { %v143_v28 = vpop.xlane.xlu0 %142 }
 0x190   :  { %v145_v30 = vmul.f32 0.01, %v143_v28 }
 0x192   :  { %v147_v31 = vsub.f32 %v145_v30, %v146_v29 }
 0x194   :  { %v149_v32 = vadd.f32 1e-05, %v147_v31 }
 0x196   :  { %372 = vrsqrt.f32 %v149_v32 }
 0x1a3   :  { %v373_v34 = vpop.eup %372 }
 0x1a4   :  { %v151_v35 = vmul.f32 %v373_v34, %v148_v33 }
 0x1a6   :  { %v152_v36 = vpack.c.bf16 %v151_v35, %v151_v35 }
 0x1a8   :  { %351 = vmatmul.mubr.bf16.vlgmr.msra.gmra.mxu1 %v152_v36 }
 0x268   :  { %v255_v40 = vpop.f32.mrf.mxu1 }
 0x269   :  { %v256_v41 = vadd.f32 %v255_v40, %v172_v38 }
 0x26a   :  { %v352_v42 = vpop.f32.mrf.mxu1 }
 0x26b   :  { %v262_v44 = vmul.f32 0.01, %v256_v41  ;;  %vm261_vm3 = vcmp.gt.f32.partialorder %v256_v41, 0.0 }
 0x26c   :  { %v258_v45 = vpop.f32.mrf.mxu1 }
 0x26d   :  { %v263_v46 = vsel %vm261_vm3, %v256_v41, %v262_v44 }
 0x26e   :  { %264 = vadd.xlane.f32.xlu1 %v263_v46  ;;  %v353_v47 = vpop.f32.mrf.mxu1  ;;  %v273_v48 = vmul.f32 %v272_v43, %v263_v46  ;;  %v266_v49 = vmul.f32 %v263_v46, %v263_v46 }
 0x270   :  { %274 = vadd.xlane.f32.xlu0 %v273_v48 }
 0x272   :  { %267 = vadd.xlane.f32.xlu1 %v266_v49 }
 0x2f7   :  { %v265_v50 = vpop.xlane.xlu1 %264 }
 0x2f8   :  { %v276_v51 = vmul.f32 0.01, %v265_v50 }
 0x2f9   :  { %v275_v61 = vpop.xlane.xlu0 %274 }
 0x2fa   :  { %v278_v53 = vmul.f32 %v276_v51, %v276_v51  ;;  %v286_v60 = vmul.f32 %v285_v58, %v276_v51 }
 0x2fb   :  { %v268_v52 = vpop.xlane.xlu1 %267 }
 0x2fc   :  { %v277_v54 = vmul.f32 0.01, %v268_v52  ;;  %v287_v63 = vsub.f32 %v275_v61, %v286_v60 }
 0x2fe   :  { %v279_v55 = vsub.f32 %v277_v54, %v278_v53 }
 0x300   :  { %v280_v56 = vadd.f32 1e-05, %v279_v55 }
 0x302   :  { %374 = vrsqrt.f32 %v280_v56 }
 0x30f   :  { %v375_v0 = vpop.eup %374 }
 0x310   :  { %v288_v1 = vmul.f32 %v375_v0, %v287_v63 }
 0x312   :  { %v293_v2 = vadd.f32 %v292_v62, %v288_v1 }
 0x314   :  { %295 = vst.msk [vmem:[%s528_s4] sm:$0xff] %vm294_vm4, %v293_v2 }
 0x315   :  { %300 = vsyncpa [#allocation3], 1 }
 0x316   :  { %301 = vsyncpa [#allocation5], 1 }
 0x317   :  { %302 = vsyncpa [#allocation8], 1 }

</bundles_post_ra>
